<compile_context>
chip_gen: v7x
topology: tpu7x:2x2x1
jax: 0.10.0
libtpu: 0.0.40
codegen_flags: <defaults>
</compile_context>

<pallas_src>
import functools
import math

import jax
import jax.numpy as jnp
from jax.experimental import pallas as pl
from jax.experimental.pallas import tpu as pltpu

HOP_LENGTH = 512  # hard-coded in PostSTFTModelWrapper.__init__


def _pad_kernel(x_ref, o_ref, *, pad_blocks, t_in, tn):
    j = pl.program_id(1)
    in_start = (j - pad_blocks) * tn          # input column of this tile's first lane

    is_data = jnp.logical_and(j >= pad_blocks, in_start < t_in)
    is_full = jnp.logical_and(is_data, in_start + tn <= t_in)
    is_tail = jnp.logical_and(is_data, in_start + tn > t_in)

    @pl.when(is_full)            # interior: single unmasked full-tile store
    def _():
        o_ref[...] = x_ref[...]

    @pl.when(is_tail)            # ragged input tail: zero the out-of-range lanes
    def _():
        col = jax.lax.broadcasted_iota(jnp.int32, o_ref.shape, 1)
        valid = (in_start + col) < t_in
        o_ref[...] = jnp.where(valid, x_ref[...], 0).astype(o_ref.dtype)

    @pl.when(jnp.logical_not(is_data))   # left / right zero pad
    def _():
        o_ref[...] = jnp.zeros_like(o_ref)


def post_stft_spec(mix: jax.Array, hop_length: int = HOP_LENGTH) -> jax.Array:
    """JAX/Pallas equivalent of PostSTFTModelWrapper.forward (== _spec)."""
    B, C, T = mix.shape
    pad = hop_length
    le = int(math.ceil(T / hop_length))
    t_out = 2 * pad + le * hop_length
    assert pad % 128 == 0, "hop_length must be a multiple of 128 for this tiling"

    rows = B * C
    x2 = mix.reshape(rows, T)

    # Lane tile: a 128-multiple divisor of pad (so pad stripes align to tile
    # boundaries). 512 lanes is already near the HBM roofline; only shrink for
    # very short inputs.
    tn = pad
    while tn > 128 and tn > max(T, 128) and (tn // 2) % 128 == 0:
        tn //= 2
    pad_blocks = pad // tn
    n_out_blocks = t_out // tn              # exact: t_out is a multiple of pad
    n_in_blocks = pl.cdiv(T, tn)

    # Row tile: all rows when small, else 256-row stripes (multiple of 8/16/32
    # sublanes for f32/bf16/int8).
    tm = rows if rows <= 256 else 256

    grid = (pl.cdiv(rows, tm), n_out_blocks)

    in_spec = pl.BlockSpec(
        (tm, tn),
        lambda i, j: (i, jnp.clip(j - pad_blocks, 0, n_in_blocks - 1)),
    )
    out_spec = pl.BlockSpec((tm, tn), lambda i, j: (i, j))

    out2 = pl.pallas_call(
        functools.partial(_pad_kernel, pad_blocks=pad_blocks, t_in=T, tn=tn),
        out_shape=jax.ShapeDtypeStruct((rows, t_out), mix.dtype),
        grid=grid,
        in_specs=[in_spec],
        out_specs=out_spec,
        compiler_params=pltpu.CompilerParams(
            dimension_semantics=("parallel", "parallel")),
    )(x2)

    return out2.reshape(B, C, t_out)


def post_stft_spec_ref(mix: jax.Array, hop_length: int = HOP_LENGTH) -> jax.Array:
    """Pure-JAX reference (mirrors custom_pad1d / F.pad constant mode)."""
    T = mix.shape[-1]
    pad = hop_length
    le = int(math.ceil(T / hop_length))
    right = pad + le * hop_length - T
    return jnp.pad(mix, ((0, 0), (0, 0), (pad, right)), mode="constant")


if __name__ == "__main__":
    key = jax.random.PRNGKey(0)

    # Small, module-consistent shapes: batch=2, channels=4, time=300 samples.
    B, C, T = 2, 4, 300
    mix = jax.random.normal(key, (B, C, T), dtype=jnp.float32)

    out = jax.block_until_ready(post_stft_spec(mix))
    ref = post_stft_spec_ref(mix)
    assert out.shape == ref.shape, (out.shape, ref.shape)
    assert out.dtype == mix.dtype
    assert jnp.allclose(out, ref), "Pallas output mismatch vs reference pad"

    # Second small case exercising full-interior, tail and right-pad tiles at TN=512.
    B2, C2, T2 = 1, 2, 1100
    mix2 = jax.random.normal(jax.random.PRNGKey(0), (B2, C2, T2), dtype=jnp.float32)
    out2 = jax.block_until_ready(post_stft_spec(mix2))
    ref2 = post_stft_spec_ref(mix2)
    assert out2.shape == ref2.shape, (out2.shape, ref2.shape)
    assert jnp.allclose(out2, ref2), "Pallas output mismatch vs reference pad (case 2)"

    print("KERNEL_OK")
</pallas_src>

<mosaic_0001>
module attributes {stable_mosaic.version = 11 : i64} {
  func.func @_pad_kernel(%arg0: i32, %arg1: i32, %arg2: memref<8x256xf32, #tpu.memory_space<vmem>>, %arg3: memref<8x256xf32, #tpu.memory_space<vmem>>) attributes {dimension_semantics = [#tpu.dimension_semantics<parallel>, #tpu.dimension_semantics<parallel>], iteration_bounds = array<i64: 1, 6>, scalar_prefetch = 0 : i64, scratch_operands = 0 : i64, tpu.core_type = #tpu.core_type<tc>, window_params = [{transform_indices = @transform_0, window_bounds = array<i64: 8, 256>}, {transform_indices = @transform_1, window_bounds = array<i64: 8, 256>}]} {
    %c2_i32 = arith.constant 2 : i32
    %0 = arith.subi %arg1, %c2_i32 : i32
    %c256_i32 = arith.constant 256 : i32
    %1 = arith.muli %0, %c256_i32 : i32
    %c2_i32_0 = arith.constant 2 : i32
    %2 = arith.cmpi sge, %arg1, %c2_i32_0 : i32
    %c300_i32 = arith.constant 300 : i32
    %3 = arith.cmpi slt, %1, %c300_i32 : i32
    %4 = arith.andi %2, %3 : i1
    %c256_i32_1 = arith.constant 256 : i32
    %5 = arith.addi %1, %c256_i32_1 : i32
    %c300_i32_2 = arith.constant 300 : i32
    %6 = arith.cmpi sle, %5, %c300_i32_2 : i32
    %7 = arith.andi %4, %6 : i1
    %c256_i32_3 = arith.constant 256 : i32
    %8 = arith.addi %1, %c256_i32_3 : i32
    %c300_i32_4 = arith.constant 300 : i32
    %9 = arith.cmpi sgt, %8, %c300_i32_4 : i32
    %10 = arith.andi %4, %9 : i1
    %11 = arith.extui %7 : i1 to i32
    %c0_i32 = arith.constant 0 : i32
    %12 = arith.cmpi ne, %11, %c0_i32 : i32
    scf.if %12 {
      %c0 = arith.constant 0 : index
      %c0_7 = arith.constant 0 : index
      %18 = vector.load %arg2[%c0, %c0_7] : memref<8x256xf32, #tpu.memory_space<vmem>>, vector<8x256xf32>
      %c0_8 = arith.constant 0 : index
      %c0_9 = arith.constant 0 : index
      %19 = vector.load %arg3[%c0_8, %c0_9] : memref<8x256xf32, #tpu.memory_space<vmem>>, vector<8x256xf32>
      tpu.vector_store %arg3[%c0_8, %c0_9], %18 {strides = array<i32>} : memref<8x256xf32, #tpu.memory_space<vmem>>, vector<8x256xf32>,
    } else {
    }
    %13 = arith.extui %10 : i1 to i32
    %c0_i32_5 = arith.constant 0 : i32
    %14 = arith.cmpi ne, %13, %c0_i32_5 : i32
    scf.if %14 {
      %18 = tpu.iota {dimensions = array<i32: 1>} : vector<8x256xi32>
      %19 = vector.broadcast %1 : i32 to vector<8x256xi32>
      %20 = arith.addi %19, %18 : vector<8x256xi32>
      %c300_i32_7 = arith.constant 300 : i32
      %21 = vector.broadcast %c300_i32_7 : i32 to vector<8x256xi32>
      %22 = arith.cmpi slt, %20, %21 : vector<8x256xi32>
      %c0 = arith.constant 0 : index
      %c0_8 = arith.constant 0 : index
      %23 = vector.load %arg2[%c0, %c0_8] : memref<8x256xf32, #tpu.memory_space<vmem>>, vector<8x256xf32>
      %c0_i32_9 = arith.constant 0 : i32
      %24 = arith.sitofp %c0_i32_9 : i32 to f32
      %25 = vector.broadcast %24 : f32 to vector<8x256xf32>
      %26 = arith.select %22, %23, %25 : vector<8x256xi1>, vector<8x256xf32>
      %c0_10 = arith.constant 0 : index
      %c0_11 = arith.constant 0 : index
      %27 = vector.load %arg3[%c0_10, %c0_11] : memref<8x256xf32, #tpu.memory_space<vmem>>, vector<8x256xf32>
      tpu.vector_store %arg3[%c0_10, %c0_11], %26 {strides = array<i32>} : memref<8x256xf32, #tpu.memory_space<vmem>>, vector<8x256xf32>,
    } else {
    }
    %true = arith.constant true
    %15 = arith.xori %4, %true : i1
    %16 = arith.extui %15 : i1 to i32
    %c0_i32_6 = arith.constant 0 : i32
    %17 = arith.cmpi ne, %16, %c0_i32_6 : i32
    scf.if %17 {
      %cst = arith.constant 0.000000e+00 : f32
      %18 = vector.broadcast %cst : f32 to vector<8x256xf32>
      %c0 = arith.constant 0 : index
      %c0_7 = arith.constant 0 : index
      %19 = vector.load %arg3[%c0, %c0_7] : memref<8x256xf32, #tpu.memory_space<vmem>>, vector<8x256xf32>
      tpu.vector_store %arg3[%c0, %c0_7], %18 {strides = array<i32>} : memref<8x256xf32, #tpu.memory_space<vmem>>, vector<8x256xf32>,
    } else {
    }
    return
  }
  func.func @transform_0(%arg0: i32, %arg1: i32) -> (i32, i32) {
    %c2_i32 = arith.constant 2 : i32
    %0 = arith.subi %arg1, %c2_i32 : i32
    %c0_i32 = arith.constant 0 : i32
    %c1_i32 = arith.constant 1 : i32
    %1 = arith.maxsi %c0_i32, %0 : i32
    %2 = arith.minsi %c1_i32, %1 : i32
    %c0_i32_0 = arith.constant 0 : i32
    return %arg0, %2 : i32, i32
  }
  func.func @transform_1(%arg0: i32, %arg1: i32) -> (i32, i32) {
    %c0_i32 = arith.constant 0 : i32
    return %arg0, %arg1 : i32, i32
  }
}

</mosaic_0001>

<bundles_post_ra>
// kernel: tpu_custom_call.1
= control target key start
LH: loop header
LB: loop body
LE: loop exit
PB: predicated region body
PF: predicated region fallthrough
CT: control target
= control target key end

     0   :  { %6 = vsyncpa [#allocation3], 0  ;;  %s824_s0 = inlined_call_operand.hbm [shape: f32[8,300], index: 0, kind: input, shape index: {}]   ;;  %s825_s1 = inlined_call_operand.hbm [shape: f32[8,1536], index: 1, kind: output, shape index: {}]  }
   0x1   :  { %8 = vsyncpa [#allocation3 + $0x1], 0 }
   0x2   :  { %9 = vsyncpa [#allocation4], 0 }
   0x3   :  { %11 = vsyncpa [#allocation4 + $0x1], 0  ;;  %s601_s6 = smov 0   ;;  %s603_s7 = smov 0  }
   0x4   :  { %s605_s8 = smov 0   ;;  %s607_s9 = smov 0  }
   0x5   :  { %s609_s10 = smov 0   ;;  %s611_s11 = smov 0  }
   0x6   :  { %s613_s12 = smov 0   ;;  %s615_s13 = smov 0  }
   0x7   :  { %s617_s14 = smov 0  }
   0x8 LB: > { %s324_s15 = sadd.s32 4294967295, %s586_s14   ;;  %s325_s16 = sadd.s32 4294967294, %s586_s14   ;;  %s586_s14 = sphi %s617_s14, %s17_s14   ;;  %s582_s13 = sphi %s615_s13, %s843_s13   ;;  %s578_s12 = sphi %s613_s12, %s842_s12   ;;  %s574_s11 = sphi %s611_s11, %s841_s11   ;;  %s570_s10 = sphi %s609_s10, %s840_s10   ;;  %s566_s9 = sphi %s607_s9, %s839_s9   ;;  %s562_s8 = sphi %s605_s8, %s838_s8   ;;  %s558_s7 = sphi %s603_s7, %s837_s7   ;;  %s554_s6 = sphi %s601_s6, %s836_s6  }
   0x9   : > { %s26_s17 = sadd.s32 1, %s582_s13  ;;  %s326_s18 = sadd.s32 4294967294, %s582_s13 }
   0xa   : > { %p27_p0 = scmp.ge.s32.totalorder %s26_s17, 6  ;;  %p34_p1 = scmp.gt.s32.totalorder %s326_s18, 0 }
   0xb   : > { %p327_p2 = scmp.lt.s32.totalorder %s326_s18, 1  ;;  %s48_s19 = sadd.s32 1, %s574_s11 }
   0xc   : > { %s845_s17 = smov (%p27_p0, %s26_s17), 0  ;;  %s847_s18 = smov (!%p34_p1, %s326_s18), 0 }
   0xd   : > { %s332_s20 = sadd.s32 4294967294, %s845_s17  ;;  %p55_p3 = scmp.ne.s32.totalorder %s574_s11, %s570_s10 }
   0xe   : > { %s849_s18 = smov (!%p327_p2, %s847_s18), 1  ;;  %p39_p4 = scmp.gt.s32.totalorder %s332_s20, 0 }
   0xf   : > { %p333_p5 = scmp.lt.s32.totalorder %s332_s20, 1  ;;  %p56_p6 = scmp.eq.s32.totalorder %s586_s14, 0 }
  0x10   : > { %p61_p7 = scmp.ne.s32.totalorder %s570_s10, %s566_s9  ;;  %s851_s20 = smov (!%p39_p4, %s332_s20), 0 }
  0x11   : > { %p658_p8 = por %p56_p6, %p55_p3  ;;  %p62_p9 = scmp.eq.s32.totalorder %s324_s15, 0 }
  0x12   : > { %s853_s20 = smov (!%p333_p5, %s851_s20), 1  ;;  %s72_s23 = ssub.s32 %s582_s13, %s845_s17 }
  0x13   : > { %p664_p10 = por %p62_p9, %p61_p7  ;;  %s44_s24 = ssub.s32 %s849_s18, %s853_s20 }
  0x14   : > { %p74_p11 = scmp.eq.s32.totalorder %s72_s23, 0  ;;  %p46_p12 = scmp.eq.s32.totalorder %s44_s24, 0 }
  0x15   : > { %s829_s22 = scalar_select %p664_p10, 1, 0 }
  0x16   : > { %s76_s25 = sadd.s32 1, %s562_s8  ;;  %p86_p13 = scmp.ne.s32.totalorder %s562_s8, %s558_s7 }
  0x17   : > { %s673_s26 = scalar_select %p74_p11, %s562_s8, %s76_s25  }
  0x18   : > { %s676_s27 = scalar_select %p46_p12, %s574_s11, %s48_s19  }
  0x19   : > { %p87_p0 = scmp.eq.s32.totalorder %s324_s15, 5  ;;  %p92_p1 = scmp.ne.s32.totalorder %s558_s7, %s554_s6 }
  0x1a   : > { %p93_p2 = scmp.eq.s32.totalorder %s325_s16, 5  ;;  %p339_p5 = scmp.ge.s32.totalorder %s586_s14, 6 }
  0x1b   : > { %p686_p3 = por %p87_p0, %p86_p13 }
  0x1c   : > { %p690_p4 = por %p93_p2, %p92_p1  ;;  %109 = sbr.rel (%p339_p5) target bundleno = 69 (0x45), region = 16 }
  0x1d   : > { %s830_s28 = scalar_select %p686_p3, 1, 0 }
  0x1e   : > { %s831_s29 = scalar_select %p690_p4, 1, 0 }
  0x23   : > { %112 = sbr.rel (!%p658_p8) target bundleno = 69 (0x45), region = 20  ;;  %s113_s30 = sand.u32 (%p658_p8), 1, %s574_s11  }
  0x24   : > { %s347_s2 = sshll.u32 (%p658_p8), %s849_s18, 1  ;;  %s340_s3 = sshll.u32 (%p658_p8), %s113_s30, 4 }
  0x25   : > { %s124_s4 = ssub.s32 (%p658_p8), 3, %s347_s2  ;;  %s702_s15 = scalar_lea.sflag (%p658_p8), [#allocation3], %s113_s30 }
  0x26   : > { %p125_p6 = scmp.lt.s32.totalorder (%p658_p8), %s124_s4, 2  ;;  %s117_s16 = scalar_lea.vmem (%p658_p8), [#allocation2], %s340_s3 }
  0x2a   : > { %s855_s4 = smov (!%p125_p6, %s124_s4), 2 }
  0x2b   : > { %s699_s5 = sshll.u32 %s855_s4, 7 }
  0x2c   : > { %s129_s9 = ssub.s32 256, %s699_s5 }
  0x2d   : > { %130 = vsyncadd %s702_s15, %s129_s9  ;;  %p349_p7 = scmp.ne.s32.totalorder %s699_s5, 0  ;;  %s369_s19 = sshll.u32 %s849_s18, 8 }
  0x2e   : > { %s710_s23 = scalar_lea.hbm %s824_s0, %s369_s19  ;;  %s138_s24 = sshll.u32 %s117_s16, 4  ;;  %s139_s24 = int_to_ptr.vmem [resolvable:$true] %s138_s24 }
  0x2f   : > { %s452_s25 = scalar_lea.hbm %s710_s23, %s699_s5  ;;  %s456_s18 = scalar_lea.hbm %s824_s0, 384 }
  0x30   : > { %p453_p8 = scmp.ne.s32.totalorder %s710_s23, %s452_s25  ;;  %p457_p12 = scmp.lt.u32.totalorder %s710_s23, %s824_s0 }
  0x31   : > { %p458_p13 = scmp.lt.u32.totalorder %s456_s18, %s452_s25  ;;  %p460_p1 = scmp.lt.u32.totalorder %s452_s25, %s710_s23 }
  0x32   : > { %p454_p9 = pnand %p453_p8, %p349_p7 }
  0x33   : > { %p459_p0 = por %p458_p13, %p457_p12 }
  0x34   : > { %p455_p11 = pneg %p454_p9 }
  0x35   : > { %p461_p2 = por %p460_p1, %p459_p0 }
  0x37   : > { %p462_p5 = pnand %p461_p2, %p455_p11 }
  0x39   : > { %465 = shalt.err (!%p462_p5)
}
  0x3a   : > { %s466_s9 = scalar_lea.vmem %s139_s24, %s699_s5  ;;  %s588_s16 = smov [#allocation2]  }
  0x3b   : > { %p467_p6 = scmp.ne.s32.totalorder %s139_s24, %s466_s9  ;;  %s470_s19 = sshll.u32 %s588_s16, 4  ;;  %s471_s19 = int_to_ptr.vmem [resolvable:$false] %s470_s19 }
  0x3c   : > { %s472_s20 = scalar_lea.vmem %s471_s19, 512  ;;  %p473_p4 = scmp.lt.s32.totalorder %s139_s24, %s471_s19 }
  0x3d   : > { %p468_p8 = pnand %p467_p6, %p349_p7  ;;  %p474_p3 = scmp.lt.s32.totalorder %s472_s20, %s466_s9 }
  0x3f   : > { %p469_p9 = pneg %p468_p8  ;;  %p475_p10 = por %p474_p3, %p473_p4 }
  0x41   : > { %p476_p12 = pnand %p475_p10, %p469_p9 }
  0x43   : > { %479 = shalt.err (!%p476_p12)
}
  0x44   : > { %141 = dma.hbm_to_vmem [thread:$0]  (%p349_p7), %s710_s23, %s699_s5, %s139_s24, %s702_s15  }
  0x45 PF: > { %p353_p11 = scmp.ge.s32.totalorder %s586_s14, 1  ;;  %p143_p13 = scmp.lt.s32.totalorder %s586_s14, 7 }
  0x47   : > { %p144_p0 = pnand %p353_p11, %p143_p13 }
  0x48   : > { %s149_s21 = sand.u32 (!%p144_p0), 1, %s570_s10   ;;  %p832_p10 = scmp.ne.s32.totalorder (!%p144_p0), %s829_s22, 0 }
  0x49   : > { %147 = sbr.rel (%p144_p0) target bundleno = 141 (0x8d), region = 24  ;;  %s354_s25 = sshll.u32 (!%p144_p0), %s149_s21, 4 }
  0x4a   : > { %s150_s30 = scalar_lea.sflag (!%p144_p0), [#allocation3], %s149_s21  ;;  %s736_s2 = scalar_lea.vmem (!%p144_p0), [#allocation2], %s354_s25 }
  0x50   : > { %545 = dma.done.wait (%p832_p10), %s150_s30, 256  }
  0x51   : > { %547 = vsyncadd (%p832_p10), %s150_s30, 4294967040  ;;  %s169_s5 = sand.u32 1, %s558_s7   ;;  %s356_s15 = sadd.s32 4294967294, %s578_s12 }
  0x52   : > { %s355_s23 = sshll.u32 %s169_s5, 4  ;;  %s357_s24 = sshll.u32 %s356_s15, 8 }
  0x53   : > { %p185_p3 = scmp.ge.s32.totalorder %s578_s12, 2  ;;  %p186_p4 = scmp.lt.s32.totalorder %s357_s24, 300 }
  0x54   : > { %s189_s18 = sadd.s32 256, %s357_s24  ;;  %s753_s22 = scalar_lea.vmem [#allocation5], %s355_s23 }
  0x55   : > { %p190_p7 = scmp.le.s32.totalorder %s189_s18, 300  ;;  %p747_p1 = pnand %p186_p4, %p185_p3 }
  0x56   : > { %p193_p2 = scmp.gt.s32.totalorder %s189_s18, 300 }
  0x57   : > { %p188_p5 = pneg %p747_p1 }
  0x59   : > { %p191_p6 = pnand %p190_p7, %p188_p5  ;;  %p194_p8 = pnand %p193_p2, %p188_p5 }
  0x5a   : > { %v198_v0 = vld [vmem:[%s736_s2] sm:$0xff] (!%p191_p6)  ;;  %v199_v1 = vld [vmem:[%s736_s2 + $0x8] sm:$0xff] (!%p191_p6) }
  0x5b   : > { %197 = sbr.rel (%p191_p6) target bundleno = 98 (0x62), region = 32  ;;  %200 = vst [vmem:[%s753_s22] sm:$0xff] (!%p191_p6), %v198_v0  ;;  %201 = vst [vmem:[%s753_s22 + $0x8] sm:$0xff] (!%p191_p6), %v199_v1 }
  0x62 PF: > { %203 = sbr.rel (%p194_p8) target bundleno = 109 (0x6d), region = 36  ;;  %v204_v2 = vlaneseq (!%p194_p8)  ;;  %v207_v3 = vstv (!%p194_p8), %s357_s24  ;;  %v212_v6 = vld [vmem:[%s736_s2] sm:$0xff] (!%p194_p8)  ;;  %v213_v9 = vld [vmem:[%s736_s2 + $0x8] sm:$0xff] (!%p194_p8) }
  0x64   : > { %v205_v4 = vand.u32 (!%p194_p8), 127, %v204_v2 }
  0x66   : > { %v208_v5 = vadd.s32 (!%p194_p8), %v207_v3, %v205_v4  ;;  %v206_v7 = vadd.s32 (!%p194_p8), 128, %v205_v4 }
  0x68   : > { %vm210_vm0 = vcmp.lt.s32.totalorder (!%p194_p8), %v208_v5, 300  ;;  %v209_v8 = vadd.s32 (!%p194_p8), %v207_v3, %v206_v7 }
  0x69   : > { %v214_v10 = vsel %vm210_vm0, %v212_v6, 0.0 }
  0x6a   : > { %216 = vst [vmem:[%s753_s22] sm:$0xff] %v214_v10  ;;  %vm211_vm1 = vcmp.lt.s32.totalorder %v209_v8, 300 }
  0x6b   : > { %v215_v11 = vsel %vm211_vm1, %v213_v9, 0.0 }
  0x6c   : > { %217 = vst [vmem:[%s753_s22 + $0x8] sm:$0xff] %v215_v11 }
  0x6d PF: > { %220 = sbr.rel (!%p747_p1) target bundleno = 116 (0x74), region = 40  ;;  %v589_v12 = vmov (%p747_p1), 0.0  }
  0x6e   : > { %221 = vst [vmem:[%s753_s22] sm:$0xff] (%p747_p1), %v589_v12  ;;  %222 = vst [vmem:[%s753_s22 + $0x8] sm:$0xff] (%p747_p1), %v589_v12 }
  0x74 PF: > { %s370_s4 = sshll.u32 %s578_s12, 8  ;;  %s240_s20 = sshll.u32 %s753_s22, 4  ;;  %s241_s20 = int_to_ptr.vmem [resolvable:$true] %s240_s20 }
  0x75   : > { %s771_s19 = scalar_lea.hbm %s825_s1, %s370_s4  ;;  %s224_s21 = scalar_lea.sflag [#allocation4], %s169_s5 }
  0x76   : > { %s480_s25 = scalar_lea.vmem %s241_s20, 256  ;;  %p834_p12 = scmp.ne.s32.totalorder %s830_s28, 0 }
  0x77   : > { %p481_p9 = scmp.ne.s32.totalorder %s241_s20, %s480_s25  ;;  %s590_s30 = smov [#allocation5]  }
  0x78   : > { %s484_s2 = sshll.u32 %s590_s30, 4  ;;  %s485_s2 = int_to_ptr.vmem [resolvable:$false] %s484_s2 }
  0x79   : > { %p482_p11 = pnand %p481_p9, %p834_p12  ;;  %s486_s15 = scalar_lea.vmem %s485_s2, 512 }
  0x7a   : > { %p487_p0 = scmp.lt.s32.totalorder %s241_s20, %s485_s2  ;;  %p488_p10 = scmp.lt.s32.totalorder %s486_s15, %s480_s25 }
  0x7b   : > { %p483_p13 = pneg %p482_p11 }
  0x7c   : > { %p489_p3 = por %p488_p10, %p487_p0 }
  0x7e   : > { %p490_p4 = pnand %p489_p3, %p483_p13 }
  0x80   : > { %493 = shalt.err (!%p490_p4)
}
  0x81   : > { %s494_s12 = scalar_lea.hbm %s771_s19, 256  ;;  %s498_s24 = scalar_lea.hbm %s825_s1, 1536 }
  0x82   : > { %p495_p7 = scmp.ne.s32.totalorder %s771_s19, %s494_s12  ;;  %p499_p5 = scmp.lt.u32.totalorder %s771_s19, %s825_s1 }
  0x83   : > { %p500_p6 = scmp.lt.u32.totalorder %s498_s24, %s494_s12  ;;  %p502_p9 = scmp.lt.u32.totalorder %s494_s12, %s771_s19 }
  0x84   : > { %p496_p1 = pnand %p495_p7, %p834_p12 }
  0x85   : > { %p501_p8 = por %p500_p6, %p499_p5 }
  0x86   : > { %p497_p2 = pneg %p496_p1 }
  0x87   : > { %p503_p11 = por %p502_p9, %p501_p8 }
  0x89   : > { %p504_p13 = pnand %p503_p11, %p497_p2 }
  0x8b   : > { %507 = shalt.err (!%p504_p13)
}
  0x8c   : > { %372 = dma.vmem_to_hbm [thread:$0]  (%p834_p12), %s241_s20, 256, %s771_s19, %s224_s21  }
  0x8d PF: > { %p378_p0 = scmp.ge.s32.totalorder %s586_s14, 2  ;;  %s252_s22 = sand.u32 1, %s554_s6  }
  0x8e   : > { %p835_p10 = scmp.ne.s32.totalorder %s831_s29, 0  ;;  %s253_s4 = scalar_lea.sflag [#allocation4], %s252_s22 }
  0x90   : > { %p375_p3 = pnand %p378_p0, %p835_p10 }
  0x92   : > { %549 = dma.done.wait (!%p375_p3), %s253_s4, 256  }
  0x93   : > { %551 = vsyncadd (!%p375_p3), %s253_s4, 4294967040  ;;  %s17_s14 = sadd.s32 1, %s586_s14   ;;  %s836_s6 = smov %s558_s7 }
  0x94   : > { %p14_p4 = scmp.ge.s32.totalorder %s17_s14, 8   ;;  %s837_s7 = smov %s562_s8 }
  0x95   : > { %s838_s8 = smov %s673_s26  ;;  %s839_s9 = smov %s570_s10 }
  0x96   : > { %s840_s10 = smov %s574_s11  ;;  %s841_s11 = smov %s676_s27 }
  0x97   : > { %s842_s12 = smov %s582_s13  ;;  %s843_s13 = smov %s845_s17 }
  0x98   :  { %16 = sbr.rel (!%p14_p4) target bundleno = 8 (0x8), region = 81 }
  0x9f   :  { %258 = vsyncpa [#allocation3], 1 }
  0xa0   :  { %260 = vsyncpa [#allocation3 + $0x1], 1 }
  0xa1   :  { %261 = vsyncpa [#allocation4], 1 }
  0xa2   :  { %263 = vsyncpa [#allocation4 + $0x1], 1 }

</bundles_post_ra>
